<compile_context>
chip_gen: v7x
topology: tpu7x:2x2x1
jax: 0.10.0
libtpu: 0.0.40
codegen_flags: <defaults>
</compile_context>

<pallas_src>
import jax
import jax.numpy as jnp
from jax.experimental import pallas as pl
from jax.experimental.pallas import tpu as pltpu


def _hash_u32(x):
    """lowbias32-style integer mixer (counter-based PRNG). uint32 in / uint32 out."""
    x = x ^ (x >> 16)
    x = x * jnp.uint32(0x7FEB352D)
    x = x ^ (x >> 15)
    x = x * jnp.uint32(0x846CA68B)
    x = x ^ (x >> 16)
    return x


def _pick_tile(dim, cap):
    """Largest tile <= cap that tiles `dim` (full dim if it already fits)."""
    if dim <= cap:
        return dim
    t = cap
    while t >= 128:
        if dim % t == 0:
            return t
        t //= 2
    raise ValueError(f"dim {dim} > {cap} must be divisible by 128")


def attention_dropout(query, key, value, inv_scale_factor, dropout_p, seed=0):
    """query (B,M,D), key (B,N,D), value (B,N,D) -> (B,M,D) float32."""
    B, M, D = query.shape
    _, N, _ = key.shape
    assert key.shape == (B, N, D) and value.shape == (B, N, D)

    # Tiles: up to 256x256 (MXU-filling on v6e/v7x, still cheap on v5e),
    # full dim when small.
    tq = _pick_tile(M, 256)
    tk = _pick_tile(N, 256)
    n_q = M // tq
    n_k = N // tk

    # ---- scalar precomputation (kills per-element divides) ----------------------
    p = jnp.clip(jnp.asarray(dropout_p, jnp.float32).reshape(()), 0.0, 1.0)
    # p == 1.0 -> everything dropped -> inv_keep = 0 so the output is exactly 0.
    inv_keep = jnp.where(p < 1.0, 1.0 / jnp.maximum(1.0 - p, jnp.float32(1e-30)),
                         jnp.float32(0.0))
    # integer dropout threshold in 24-bit space: drop iff hash_bits_24 < thresh.
    thresh24 = jnp.round(p * jnp.float32(1 << 24)).astype(jnp.int32)
    scale_mult = (1.0 / jnp.asarray(inv_scale_factor, jnp.float32)).reshape(())

    scal_f32 = jnp.stack([scale_mult, inv_keep])                       # (2,) f32, SMEM
    scal_i32 = jnp.stack([jnp.asarray(seed, jnp.int32), thresh24])     # (2,) i32, SMEM

    def kernel(sf_ref, si_ref, q_ref, k_ref, v_ref, o_ref, m_scr, l_scr, acc_scr):
        b = pl.program_id(0)
        qi = pl.program_id(1)
        ki = pl.program_id(2)
        nk = pl.num_programs(2)

        @pl.when(ki == 0)
        def _init():
            m_scr[...] = jnp.full_like(m_scr, -jnp.inf)
            l_scr[...] = jnp.zeros_like(l_scr)
            acc_scr[...] = jnp.zeros_like(acc_scr)

        scale_s = sf_ref[0]       # 1 / inv_scale_factor
        inv_keep_s = sf_ref[1]    # 1 / (1 - p)   (0 when p >= 1)
        seed_s = si_ref[0]
        thresh_s = si_ref[1]      # 24-bit dropout threshold

        # MXU operands in bf16 (scale folded into Q before the cast), f32 accumulate.
        q_bf = (q_ref[...] * scale_s).astype(jnp.bfloat16)     # (tq, D)
        k_bf = k_ref[...].astype(jnp.bfloat16)                  # (tk, D)

        # scores: (tq, tk), 2-D MXU dot, f32 accumulation.
        s = jax.lax.dot_general(q_bf, k_bf, (((1,), (1,)), ((), ())),
                                preferred_element_type=jnp.float32)

        m_prev = m_scr[...]                                      # (tq, 1)
        m_new = jnp.maximum(m_prev, jnp.max(s, axis=-1, keepdims=True))
        alpha = jnp.exp(m_prev - m_new)

        # ---- dropout mask FIRST (int temporaries die before e is live) ---------
        # counter = seed + ((b*M + row)*N + col), built with a scalar base and
        # (tq,1)/(1,tk) iotas + broadcast adds (no full-tile index multiply).
        base = (seed_s + b * (M * N) + (qi * tq) * N + ki * tk).astype(jnp.uint32)
        row_term = (jax.lax.broadcasted_iota(jnp.uint32, (tq, 1), 0)
                    * jnp.uint32(N))                              # (tq, 1)
        col_term = jax.lax.broadcasted_iota(jnp.uint32, (1, tk), 1)  # (1, tk)
        bits = _hash_u32(base + row_term + col_term)              # (tq, tk) uint32
        r24 = (bits >> 8).astype(jnp.int32)                       # uniform in [0, 2^24)
        keep_f = (r24 >= thresh_s).astype(jnp.float32)            # (tq, tk) 0/1

        # ---- online softmax (normalization uses the UN-dropped exp sum) --------
        e = jnp.exp(s - m_new)                                    # (tq, tk)
        l_scr[...] = alpha * l_scr[...] + jnp.sum(e, axis=-1, keepdims=True)

        e_drop = (e * keep_f).astype(jnp.bfloat16)                # MXU operand
        v_bf = v_ref[...].astype(jnp.bfloat16)                    # (tk, D)

        # accumulate dropped, unnormalized probs @ V   (dropout commutes with the
        # final 1/l and 1/(1-p) scalings, so this matches dropout(softmax) @ V).
        acc_scr[...] = alpha * acc_scr[...] + jax.lax.dot_general(
            e_drop, v_bf, (((1,), (0,)), ((), ())),
            preferred_element_type=jnp.float32)
        m_scr[...] = m_new

        @pl.when(ki == nk - 1)
        def _finalize():
            # approx reciprocal lives on the EUP slot; only a (tq,1) op remains.
            inv_l = pl.reciprocal(l_scr[...], approx=True) * inv_keep_s
            o_ref[...] = (acc_scr[...] * inv_l).astype(o_ref.dtype)

    return pl.pallas_call(
        kernel,
        out_shape=jax.ShapeDtypeStruct((B, M, D), jnp.float32),
        grid=(B, n_q, n_k),
        in_specs=[
            pl.BlockSpec(memory_space=pltpu.MemorySpace.SMEM),              # scalars f32
            pl.BlockSpec(memory_space=pltpu.MemorySpace.SMEM),              # scalars i32
            pl.BlockSpec((None, tq, D), lambda b, qi, ki: (b, qi, 0)),      # Q tile
            pl.BlockSpec((None, tk, D), lambda b, qi, ki: (b, ki, 0)),      # K tile
            pl.BlockSpec((None, tk, D), lambda b, qi, ki: (b, ki, 0)),      # V tile
        ],
        out_specs=pl.BlockSpec((None, tq, D), lambda b, qi, ki: (b, qi, 0)),
        scratch_shapes=[
            pltpu.VMEM((tq, 1), jnp.float32),   # running max
            pltpu.VMEM((tq, 1), jnp.float32),   # running sum
            pltpu.VMEM((tq, D), jnp.float32),   # output accumulator
        ],
        compiler_params=pltpu.CompilerParams(
            dimension_semantics=("parallel", "parallel", "arbitrary"),
            vmem_limit_bytes=32 * 1024 * 1024,   # safe on v5e/v6e/v7x
        ),
    )(scal_f32, scal_i32, query, key, value)


if __name__ == "__main__":
    rng = jax.random.PRNGKey(0)
    kq, kk, kv = jax.random.split(rng, 3)

    # Shapes from the module's sample inputs.
    query = jax.random.normal(kq, (1, 4, 16), dtype=jnp.float32)
    key = jax.random.normal(kk, (1, 8, 16), dtype=jnp.float32)
    value = jax.random.normal(kv, (1, 8, 16), dtype=jnp.float32)

    inv_scale_factor = 4.0   # e.g. sqrt(d_k) = sqrt(16)
    dropout_p = 0.25

    out = attention_dropout(query, key, value, inv_scale_factor, dropout_p, seed=123)
    out = jax.block_until_ready(out)
    assert out.shape == (1, 4, 16) and out.dtype == jnp.float32
    assert bool(jnp.all(jnp.isfinite(out)))

    # Sanity check against a pure-JAX f32 reference with dropout disabled (p = 0).
    # Tolerance loosened because the in-kernel matmuls use bf16 MXU operands.
    out_nodrop = jax.block_until_ready(
        attention_dropout(query, key, value, inv_scale_factor, 0.0, seed=123)
    )
    qk = jnp.einsum("bmd,bnd->bmn", query, key) / inv_scale_factor
    ref = jnp.einsum("bmn,bnd->bmd", jax.nn.softmax(qk, axis=-1), value)
    assert jnp.allclose(out_nodrop, ref, atol=3e-2, rtol=3e-2)

    # p = 1 must give exactly zeros (matches torch.nn.functional.dropout(p=1)).
    out_p1 = jax.block_until_ready(
        attention_dropout(query, key, value, inv_scale_factor, 1.0, seed=123)
    )
    assert bool(jnp.all(out_p1 == 0.0))

    print("KERNEL_OK")
</pallas_src>

<mosaic_0001>
module attributes {stable_mosaic.version = 11 : i64} {
  func.func @kernel(%arg0: i32, %arg1: i32, %arg2: i32, %arg3: memref<2xf32, #tpu.memory_space<smem>>, %arg4: memref<2xi32, #tpu.memory_space<smem>>, %arg5: memref<1x4x16xf32, #tpu.memory_space<vmem>>, %arg6: memref<1x8x16xf32, #tpu.memory_space<vmem>>, %arg7: memref<1x8x16xf32, #tpu.memory_space<vmem>>, %arg8: memref<1x4x16xf32, #tpu.memory_space<vmem>>, %arg9: memref<4x1xf32, #tpu.memory_space<vmem>>, %arg10: memref<4x1xf32, #tpu.memory_space<vmem>>, %arg11: memref<4x16xf32, #tpu.memory_space<vmem>>) attributes {dimension_semantics = [#tpu.dimension_semantics<parallel>, #tpu.dimension_semantics<parallel>, #tpu.dimension_semantics<arbitrary>], iteration_bounds = array<i64: 1, 1, 1>, scalar_prefetch = 0 : i64, scratch_operands = 3 : i64, tpu.core_type = #tpu.core_type<tc>, window_params = [{transform_indices = @transform_0, window_bounds = array<i64: 2>}, {transform_indices = @transform_1, window_bounds = array<i64: 2>}, {transform_indices = @transform_2, window_bounds = array<i64: 1, 4, 16>}, {transform_indices = @transform_3, window_bounds = array<i64: 1, 8, 16>}, {transform_indices = @transform_4, window_bounds = array<i64: 1, 8, 16>}, {transform_indices = @transform_5, window_bounds = array<i64: 1, 4, 16>}]} {
    %c0_i32 = arith.constant 0 : i32
    %0 = arith.cmpi eq, %arg2, %c0_i32 : i32
    %1 = arith.extui %0 : i1 to i32
    %c0_i32_0 = arith.constant 0 : i32
    %2 = arith.cmpi ne, %1, %c0_i32_0 : i32
    scf.if %2 {
      %cst_33 = arith.constant 0xFF800000 : f32
      %81 = vector.broadcast %cst_33 : f32 to vector<4x1xf32>
      %c0_34 = arith.constant 0 : index
      %c0_35 = arith.constant 0 : index
      %82 = vector.load %arg9[%c0_34, %c0_35] : memref<4x1xf32, #tpu.memory_space<vmem>>, vector<4x1xf32>
      tpu.vector_store %arg9[%c0_34, %c0_35], %81 {strides = array<i32>} : memref<4x1xf32, #tpu.memory_space<vmem>>, vector<4x1xf32>,
      %cst_36 = arith.constant 0.000000e+00 : f32
      %83 = vector.broadcast %cst_36 : f32 to vector<4x1xf32>
      %c0_37 = arith.constant 0 : index
      %c0_38 = arith.constant 0 : index
      %84 = vector.load %arg10[%c0_37, %c0_38] : memref<4x1xf32, #tpu.memory_space<vmem>>, vector<4x1xf32>
      tpu.vector_store %arg10[%c0_37, %c0_38], %83 {strides = array<i32>} : memref<4x1xf32, #tpu.memory_space<vmem>>, vector<4x1xf32>,
      %cst_39 = arith.constant 0.000000e+00 : f32
      %85 = vector.broadcast %cst_39 : f32 to vector<4x16xf32>
      %c0_40 = arith.constant 0 : index
      %c0_41 = arith.constant 0 : index
      %86 = vector.load %arg11[%c0_40, %c0_41] : memref<4x16xf32, #tpu.memory_space<vmem>>, vector<4x16xf32>
      tpu.vector_store %arg11[%c0_40, %c0_41], %85 {strides = array<i32>} : memref<4x16xf32, #tpu.memory_space<vmem>>, vector<4x16xf32>,
    } else {
    }
    %c0 = arith.constant 0 : index
    %3 = memref.load %arg3[%c0] : memref<2xf32, #tpu.memory_space<smem>>
    %c1 = arith.constant 1 : index
    %4 = memref.load %arg3[%c1] : memref<2xf32, #tpu.memory_space<smem>>
    %c0_1 = arith.constant 0 : index
    %5 = memref.load %arg4[%c0_1] : memref<2xi32, #tpu.memory_space<smem>>
    %c1_2 = arith.constant 1 : index
    %6 = memref.load %arg4[%c1_2] : memref<2xi32, #tpu.memory_space<smem>>
    %c0_3 = arith.constant 0 : index
    %c0_4 = arith.constant 0 : index
    %c0_5 = arith.constant 0 : index
    %7 = vector.load %arg5[%c0_3, %c0_4, %c0_5] : memref<1x4x16xf32, #tpu.memory_space<vmem>>, vector<1x4x16xf32>
    %8 = vector.shape_cast %7 : vector<1x4x16xf32> to vector<4x16xf32>
    %9 = vector.broadcast %3 : f32 to vector<4x16xf32>
    %10 = arith.mulf %8, %9 : vector<4x16xf32>
    %11 = arith.truncf %10 : vector<4x16xf32> to vector<4x16xbf16>
    %c0_6 = arith.constant 0 : index
    %c0_7 = arith.constant 0 : index
    %c0_8 = arith.constant 0 : index
    %12 = vector.load %arg6[%c0_6, %c0_7, %c0_8] : memref<1x8x16xf32, #tpu.memory_space<vmem>>, vector<1x8x16xf32>
    %13 = vector.shape_cast %12 : vector<1x8x16xf32> to vector<8x16xf32>
    %14 = arith.truncf %13 : vector<8x16xf32> to vector<8x16xbf16>
    %cst = arith.constant dense<0.000000e+00> : vector<4x8xf32>
    %15 = tpu.matmul %11, %14, %cst {dimension_numbers = #tpu.dot_dimension_numbers<[1], [1], [0], [0], [0, 0, 1, 0], [], []>} : vector<4x16xbf16>, vector<8x16xbf16>, vector<4x8xf32> -> vector<4x8xf32>
    %c0_9 = arith.constant 0 : index
    %c0_10 = arith.constant 0 : index
    %16 = vector.load %arg9[%c0_9, %c0_10] : memref<4x1xf32, #tpu.memory_space<vmem>>, vector<4x1xf32>
    %cst_11 = arith.constant dense<0xFF800000> : vector<4xf32>
    %17 = vector.multi_reduction <maximumf>, %15, %cst_11 [1] : vector<4x8xf32> to vector<4xf32>
    %18 = vector.shape_cast %17 : vector<4xf32> to vector<4x1xf32>
    %19 = arith.maximumf %16, %18 : vector<4x1xf32>
    %20 = arith.subf %16, %19 : vector<4x1xf32>
    %21 = math.exp %20 : vector<4x1xf32>
    %c32_i32 = arith.constant 32 : i32
    %22 = arith.muli %arg0, %c32_i32 : i32
    %23 = arith.addi %5, %22 : i32
    %c4_i32 = arith.constant 4 : i32
    %24 = arith.muli %arg1, %c4_i32 : i32
    %c8_i32 = arith.constant 8 : i32
    %25 = arith.muli %24, %c8_i32 : i32
    %26 = arith.addi %23, %25 : i32
    %c8_i32_12 = arith.constant 8 : i32
    %27 = arith.muli %arg2, %c8_i32_12 : i32
    %28 = arith.addi %26, %27 : i32
    %29 = tpu.iota {dimensions = array<i32: 0>} : vector<4x1xi32>
    %c8_i32_13 = arith.constant 8 : i32
    %30 = vector.broadcast %c8_i32_13 : i32 to vector<4x1xi32>
    %31 = arith.muli %29, %30 : vector<4x1xi32>
    %32 = tpu.iota {dimensions = array<i32: 1>} : vector<1x8xi32>
    %33 = vector.broadcast %28 : i32 to vector<4x1xi32>
    %34 = arith.addi %33, %31 : vector<4x1xi32>
    %35 = vector.broadcast %34 : vector<4x1xi32> to vector<4x8xi32>
    %36 = vector.broadcast %32 : vector<1x8xi32> to vector<4x8xi32>
    %37 = arith.addi %35, %36 : vector<4x8xi32>
    %c16_i32 = arith.constant 16 : i32
    %38 = vector.broadcast %c16_i32 : i32 to vector<4x8xi32>
    %39 = arith.shrui %37, %38 : vector<4x8xi32>
    %40 = arith.xori %37, %39 : vector<4x8xi32>
    %c2146121005_i32 = arith.constant 2146121005 : i32
    %41 = vector.broadcast %c2146121005_i32 : i32 to vector<4x8xi32>
    %42 = arith.muli %40, %41 : vector<4x8xi32>
    %c15_i32 = arith.constant 15 : i32
    %43 = vector.broadcast %c15_i32 : i32 to vector<4x8xi32>
    %44 = arith.shrui %42, %43 : vector<4x8xi32>
    %45 = arith.xori %42, %44 : vector<4x8xi32>
    %c-2073254261_i32 = arith.constant -2073254261 : i32
    %46 = vector.broadcast %c-2073254261_i32 : i32 to vector<4x8xi32>
    %47 = arith.muli %45, %46 : vector<4x8xi32>
    %c16_i32_14 = arith.constant 16 : i32
    %48 = vector.broadcast %c16_i32_14 : i32 to vector<4x8xi32>
    %49 = arith.shrui %47, %48 : vector<4x8xi32>
    %50 = arith.xori %47, %49 : vector<4x8xi32>
    %c8_i32_15 = arith.constant 8 : i32
    %51 = vector.broadcast %c8_i32_15 : i32 to vector<4x8xi32>
    %52 = arith.shrui %50, %51 : vector<4x8xi32>
    %53 = vector.broadcast %6 : i32 to vector<4x8xi32>
    %54 = arith.cmpi sge, %52, %53 : vector<4x8xi32>
    %55 = arith.extui %54 : vector<4x8xi1> to vector<4x8xi32>
    %56 = arith.sitofp %55 : vector<4x8xi32> to vector<4x8xf32>
    %57 = vector.broadcast %19 : vector<4x1xf32> to vector<4x8xf32>
    %58 = arith.subf %15, %57 : vector<4x8xf32>
    %59 = math.exp %58 : vector<4x8xf32>
    %c0_16 = arith.constant 0 : index
    %c0_17 = arith.constant 0 : index
    %60 = vector.load %arg10[%c0_16, %c0_17] : memref<4x1xf32, #tpu.memory_space<vmem>>, vector<4x1xf32>
    %61 = arith.mulf %21, %60 : vector<4x1xf32>
    %cst_18 = arith.constant dense<0.000000e+00> : vector<4xf32>
    %62 = vector.multi_reduction <add>, %59, %cst_18 [1] : vector<4x8xf32> to vector<4xf32>
    %63 = vector.shape_cast %62 : vector<4xf32> to vector<4x1xf32>
    %64 = arith.addf %61, %63 : vector<4x1xf32>
    %c0_19 = arith.constant 0 : index
    %c0_20 = arith.constant 0 : index
    %65 = vector.load %arg10[%c0_19, %c0_20] : memref<4x1xf32, #tpu.memory_space<vmem>>, vector<4x1xf32>
    tpu.vector_store %arg10[%c0_19, %c0_20], %64 {strides = array<i32>} : memref<4x1xf32, #tpu.memory_space<vmem>>, vector<4x1xf32>,
    %66 = arith.mulf %59, %56 : vector<4x8xf32>
    %67 = arith.truncf %66 : vector<4x8xf32> to vector<4x8xbf16>
    %c0_21 = arith.constant 0 : index
    %c0_22 = arith.constant 0 : index
    %c0_23 = arith.constant 0 : index
    %68 = vector.load %arg7[%c0_21, %c0_22, %c0_23] : memref<1x8x16xf32, #tpu.memory_space<vmem>>, vector<1x8x16xf32>
    %69 = vector.shape_cast %68 : vector<1x8x16xf32> to vector<8x16xf32>
    %70 = arith.truncf %69 : vector<8x16xf32> to vector<8x16xbf16>
    %c0_24 = arith.constant 0 : index
    %c0_25 = arith.constant 0 : index
    %71 = vector.load %arg11[%c0_24, %c0_25] : memref<4x16xf32, #tpu.memory_space<vmem>>, vector<4x16xf32>
    %72 = vector.broadcast %21 : vector<4x1xf32> to vector<4x16xf32>
    %73 = arith.mulf %72, %71 : vector<4x16xf32>
    %cst_26 = arith.constant dense<0.000000e+00> : vector<4x16xf32>
    %74 = tpu.matmul %67, %70, %cst_26 {dimension_numbers = #tpu.dot_dimension_numbers<[1], [0], [0], [1], [0, 0, 1, 1], [], []>} : vector<4x8xbf16>, vector<8x16xbf16>, vector<4x16xf32> -> vector<4x16xf32>
    %75 = arith.addf %73, %74 : vector<4x16xf32>
    %c0_27 = arith.constant 0 : index
    %c0_28 = arith.constant 0 : index
    %76 = vector.load %arg11[%c0_27, %c0_28] : memref<4x16xf32, #tpu.memory_space<vmem>>, vector<4x16xf32>
    tpu.vector_store %arg11[%c0_27, %c0_28], %75 {strides = array<i32>} : memref<4x16xf32, #tpu.memory_space<vmem>>, vector<4x16xf32>,
    %c0_29 = arith.constant 0 : index
    %c0_30 = arith.constant 0 : index
    %77 = vector.load %arg9[%c0_29, %c0_30] : memref<4x1xf32, #tpu.memory_space<vmem>>, vector<4x1xf32>
    tpu.vector_store %arg9[%c0_29, %c0_30], %19 {strides = array<i32>} : memref<4x1xf32, #tpu.memory_space<vmem>>, vector<4x1xf32>,
    %c0_i32_31 = arith.constant 0 : i32
    %78 = arith.cmpi eq, %arg2, %c0_i32_31 : i32
    %79 = arith.extui %78 : i1 to i32
    %c0_i32_32 = arith.constant 0 : i32
    %80 = arith.cmpi ne, %79, %c0_i32_32 : i32
    scf.if %80 {
      %c0_33 = arith.constant 0 : index
      %c0_34 = arith.constant 0 : index
      %81 = vector.load %arg10[%c0_33, %c0_34] : memref<4x1xf32, #tpu.memory_space<vmem>>, vector<4x1xf32>
      %82 = tpu.reciprocal %81 {approx = true} : vector<4x1xf32> -> vector<4x1xf32>
      %83 = vector.broadcast %4 : f32 to vector<4x1xf32>
      %84 = arith.mulf %82, %83 : vector<4x1xf32>
      %c0_35 = arith.constant 0 : index
      %c0_36 = arith.constant 0 : index
      %85 = vector.load %arg11[%c0_35, %c0_36] : memref<4x16xf32, #tpu.memory_space<vmem>>, vector<4x16xf32>
      %86 = vector.broadcast %84 : vector<4x1xf32> to vector<4x16xf32>
      %87 = arith.mulf %85, %86 : vector<4x16xf32>
      %c0_37 = arith.constant 0 : index
      %c0_38 = arith.constant 0 : index
      %c0_39 = arith.constant 0 : index
      %88 = vector.load %arg8[%c0_37, %c0_38, %c0_39] : memref<1x4x16xf32, #tpu.memory_space<vmem>>, vector<1x4x16xf32>
      %89 = vector.shape_cast %88 : vector<1x4x16xf32> to vector<4x16xf32>
      %90 = vector.shape_cast %87 : vector<4x16xf32> to vector<1x4x16xf32>
      tpu.vector_store %arg8[%c0_37, %c0_38, %c0_39], %90 {strides = array<i32>} : memref<1x4x16xf32, #tpu.memory_space<vmem>>, vector<1x4x16xf32>,
    } else {
    }
    return
  }
  func.func @transform_0(%arg0: i32, %arg1: i32, %arg2: i32) -> i32 {
    %c0_i32 = arith.constant 0 : i32
    %c0_i32_0 = arith.constant 0 : i32
    return %c0_i32 : i32
  }
  func.func @transform_1(%arg0: i32, %arg1: i32, %arg2: i32) -> i32 {
    %c0_i32 = arith.constant 0 : i32
    %c0_i32_0 = arith.constant 0 : i32
    return %c0_i32 : i32
  }
  func.func @transform_2(%arg0: i32, %arg1: i32, %arg2: i32) -> (i32, i32, i32) {
    %c0_i32 = arith.constant 0 : i32
    %c0_i32_0 = arith.constant 0 : i32
    return %arg0, %arg1, %c0_i32 : i32, i32, i32
  }
  func.func @transform_3(%arg0: i32, %arg1: i32, %arg2: i32) -> (i32, i32, i32) {
    %c0_i32 = arith.constant 0 : i32
    %c0_i32_0 = arith.constant 0 : i32
    return %arg0, %arg2, %c0_i32 : i32, i32, i32
  }
  func.func @transform_4(%arg0: i32, %arg1: i32, %arg2: i32) -> (i32, i32, i32) {
    %c0_i32 = arith.constant 0 : i32
    %c0_i32_0 = arith.constant 0 : i32
    return %arg0, %arg2, %c0_i32 : i32, i32, i32
  }
  func.func @transform_5(%arg0: i32, %arg1: i32, %arg2: i32) -> (i32, i32, i32) {
    %c0_i32 = arith.constant 0 : i32
    %c0_i32_0 = arith.constant 0 : i32
    return %arg0, %arg1, %c0_i32 : i32, i32, i32
  }
}

</mosaic_0001>

<bundles_post_ra>
// kernel: tpu_custom_call.1
= control target key start
LH: loop header
LB: loop body
LE: loop exit
PB: predicated region body
PF: predicated region fallthrough
CT: control target
= control target key end

     0   :  { %10 = vsyncpa [#allocation8], 0  ;;  %s528_s0 = inlined_call_operand.hbm [shape: f32[2], index: 0, kind: input, shape index: {}]   ;;  %s529_s1 = inlined_call_operand.vmem [shape: s32[2], index: 1, kind: input, shape index: {}]   ;;  %s530_s2 = inlined_call_operand.hbm [shape: f32[1,4,16], index: 2, kind: input, shape index: {}]   ;;  %s531_s3 = inlined_call_operand.vmem [shape: f32[1,8,16], index: 3, kind: input, shape index: {}]   ;;  %s532_s4 = inlined_call_operand.hbm [shape: f32[1,8,16], index: 4, kind: input, shape index: {}]   ;;  %s533_s5 = inlined_call_operand.hbm [shape: f32[1,4,16], index: 5, kind: output, shape index: {}]  }
   0x1   :  { %11 = vsyncpa [#allocation9], 0 }
   0x2   :  { %12 = vsyncpa [#allocation6], 0 }
   0x3   :  { %13 = vsyncpa [#allocation13], 0 }
   0x4   :  { %14 = vsyncpa [#allocation7], 0  ;;  %s29_s20 = sshll.u32 %s529_s1, 4  ;;  %s321_s23 = scalar_lea.hbm %s528_s0, 16  ;;  %s30_s20 = int_to_ptr.vmem [resolvable:$true] %s29_s20 }
   0x5   :  { %p322_p0 = scmp.ne.s32.totalorder %s528_s0, %s321_s23  ;;  %p325_p1 = scmp.lt.u32.totalorder %s321_s23, %s528_s0 }
   0x7   :  { %p327_p2 = pnand %p325_p1, %p322_p0 }
   0x9   :  { %330 = shalt.err (!%p327_p2)
}
   0xa   :  { %s419_s28 = smov [#allocation5]   ;;  %s331_s1 = scalar_lea.vmem %s30_s20, 16 }
   0xb   :  { %22 = dma.hbm_to_smem %s528_s0, 16, %s419_s28, [#allocation8]  }
   0xc   :  { %p332_p3 = scmp.ne.s32.totalorder %s30_s20, %s331_s1  ;;  %p336_p4 = scmp.lt.s32.totalorder %s30_s20, %s30_s20 }
   0xd   :  { %p337_p5 = scmp.lt.s32.totalorder %s331_s1, %s331_s1 }
   0xf   :  { %p338_p6 = por %p337_p5, %p336_p4 }
  0x11   :  { %p339_p7 = pnand %p338_p6, %p332_p3 }
  0x13   :  { %342 = shalt.err (!%p339_p7)
}
  0x14   :  { %s420_s6 = smov [#allocation10]   ;;  %s421_s7 = smov [#allocation11]  }
  0x15   :  { %32 = dma.vmem_to_smem %s30_s20, 16, %s420_s6, [#allocation9]  }
  0x16   :  { %s39_s8 = sshll.u32 %s421_s7, 4  ;;  %s422_s9 = smov [#allocation12]   ;;  %s40_s8 = int_to_ptr.vmem [resolvable:$true] %s39_s8 }
  0x17   :  { %s51_s10 = sshll.u32 %s422_s9, 4  ;;  %s343_s0 = scalar_lea.hbm %s530_s2, 64  ;;  %s52_s10 = int_to_ptr.vmem [resolvable:$true] %s51_s10 }
  0x18   :  { %p344_p8 = scmp.ne.s32.totalorder %s530_s2, %s343_s0  ;;  %p347_p9 = scmp.lt.u32.totalorder %s343_s0, %s530_s2 }
  0x1a   :  { %p349_p10 = pnand %p347_p9, %p344_p8 }
  0x1c   :  { %352 = shalt.err (!%p349_p10)
}
  0x1d   :  { %s353_s17 = scalar_lea.vmem %s40_s8, 64  ;;  %p358_p12 = scmp.lt.s32.totalorder %s40_s8, %s40_s8 }
  0x1e   :  { %p354_p11 = scmp.ne.s32.totalorder %s40_s8, %s353_s17  ;;  %p359_p13 = scmp.lt.s32.totalorder %s353_s17, %s353_s17 }
  0x20   :  { %p360_p0 = por %p359_p13, %p358_p12 }
  0x22   :  { %p361_p1 = pnand %p360_p0, %p354_p11 }
  0x24   :  { %364 = shalt.err (!%p361_p1)
}
  0x25   :  { %42 = dma.hbm_to_vmem [thread:$0]  %s530_s2, 64, %s40_s8, [#allocation6]  }
  0x26   :  { %s365_s22 = scalar_lea.hbm %s532_s4, 128 }
  0x27   :  { %p366_p2 = scmp.ne.s32.totalorder %s532_s4, %s365_s22  ;;  %p369_p3 = scmp.lt.u32.totalorder %s365_s22, %s532_s4 }
  0x29   :  { %p371_p4 = pnand %p369_p3, %p366_p2 }
  0x2b   :  { %374 = shalt.err (!%p371_p4)
}
  0x2c   :  { %s375_s27 = scalar_lea.vmem %s52_s10, 128  ;;  %p380_p6 = scmp.lt.s32.totalorder %s52_s10, %s52_s10 }
  0x2d   :  { %p376_p5 = scmp.ne.s32.totalorder %s52_s10, %s375_s27  ;;  %p381_p7 = scmp.lt.s32.totalorder %s375_s27, %s375_s27 }
  0x2f   :  { %p382_p8 = por %p381_p7, %p380_p6 }
  0x31   :  { %p383_p9 = pnand %p382_p8, %p376_p5 }
  0x33   :  { %386 = shalt.err (!%p383_p9)
}
  0x34   :  { %54 = dma.hbm_to_vmem [thread:$0]  %s532_s4, 128, %s52_s10, [#allocation13]  }
  0x35   :  { %409 = dma.done.wait [#allocation8], 16  }
  0x36   :  { %410 = vsyncadd [#allocation8], 4294967280 }
  0x37   :  { %411 = dma.done.wait [#allocation9], 16  }
  0x38   :  { %412 = vsyncadd [#allocation9], 4294967280 }
  0x39   :  { %413 = dma.done.wait [#allocation6], 64  }
  0x3a   :  { %414 = vsyncadd [#allocation6], 4294967232 }
  0x3b   :  { %415 = dma.done.wait [#allocation13], 128  }
  0x3c   :  { %416 = vsyncadd [#allocation13], 4294967168 }
  0x3d   :  { %67 = sfence }
  0x3e   :  { %v86_v0 = vld [vmem:[%s531_s3] sm:$0xff]  ;;  %vm88_vm0 = vcmask 130048   ;;  %s78_s1 = sld [smem:[#allocation5]]  ;;  %v423_v1 = vmov 0.0   ;;  %vm424_vm1 = vmmov 0   ;;  %vm136_vm2 = vcmask 60416  }
  0x3f   :  { %292 = vmatprep.subr.bf16.mxu0 %v423_v1  ;;  %v87_v2 = vpack.c.bf16 %v86_v0, %v86_v0  ;;  %294 = vmatprep.mubr.msk.bf16.mxu0 %vm424_vm1, %v423_v1  ;;  %v82_v4 = vld [vmem:[#allocation11] sm:$0xf]  ;;  %vm73_vm3 = vcmask 3072   ;;  %v425_v13 = vmov -inf   ;;  %v426_v14 = vmov 0   ;;  %v189_v19 = vld [vmem:[#allocation12] sm:$0xff] }
  0x40   :  { %298 = vmatprep.subr.bf16.mxu1 %v423_v1  ;;  %300 = vmatprep.mubr.msk.bf16.mxu1 %vm424_vm1, %v423_v1  ;;  %74 = vst.msk [vmem:[#allocation2] sm:$0xf] %vm73_vm3, %v425_v13  ;;  %75 = vst.msk [vmem:[#allocation3] sm:$0xf] %vm73_vm3, %v423_v1  ;;  %vm202_vm4 = vcmask 1043456   ;;  %v190_v20 = vpack.c.bf16 %v189_v19, %v189_v19  ;;  %v150_v22 = vlaneseq  ;;  %s80_s3 = sld [smem:[#allocation10]] }
  0x41   :  { %v93_v3 = vsel %vm88_vm0, %v87_v2, 0  ;;  %313 = vset.pattern.permute.xlu0 %v426_v14  ;;  %314 = vset.pattern.permute.xlu1 %v426_v14  ;;  %s284_s4 = sld [smem:[#allocation10 + $0x1]]  ;;  %vm198_vm6 = vcmask 64512   ;;  %vm76_vm7 = vcmask 125952   ;;  %s427_s7 = smov [#allocation14]  }
  0x42   :  { %293 = vmatpush3.bf16.xpose.msra.mxu0 %v93_v3  ;;  %v204_v21 = vsel %vm202_vm4, %v190_v20, 0  ;;  %v151_v23 = vshrl.u32 %v150_v22, 7  ;;  %v154_v26 = vand.u32 127, %v150_v22  ;;  %77 = vst.msk [vmem:[#allocation4] sm:$0xf] %vm76_vm7, %v423_v1  ;;  %s283_s6 = sld [smem:[#allocation5 + $0x1]] }
  0x43   :  { %299 = vmatpush3.bf16.msra.mxu1 %v204_v21  ;;  %s271_s8 = sshll.u32 %s427_s7, 4  ;;  %s272_s8 = int_to_ptr.vmem [resolvable:$true] %s271_s8 }
  0x44   :  { %v83_v5 = vstv %s78_s1  ;;  %v152_v24 = vmul.u32 8, %v151_v23  ;;  %s387_s9 = scalar_lea.vmem %s272_s8, 64  ;;  %p392_p11 = scmp.lt.s32.totalorder %s272_s8, %s272_s8 }
  0x45   :  { %v84_v6 = vmul.f32 %v83_v5, %v82_v4  ;;  %p388_p10 = scmp.ne.s32.totalorder %s272_s8, %s387_s9  ;;  %p393_p12 = scmp.lt.s32.totalorder %s387_s9, %s387_s9 }
  0x46   :  { %v155_v25 = vstv %s80_s3 }
  0x47   :  { %v85_v7 = vpack.c.bf16 %v84_v6, %v84_v6  ;;  %v135_v15 = vld [vmem:[#allocation2] sm:$0xf]  ;;  %v156_v27 = vadd.s32 %v155_v25, %v152_v24  ;;  %v167_v41 = vstv %s284_s4  ;;  %v179_v49 = vld [vmem:[#allocation3] sm:$0xf]  ;;  %p394_p13 = por %p393_p12, %p392_p11 }
  0x48   :  { %v255_v54 = vstv %s283_s6 }
  0x49   :  { %295 = vmatmul.mubr.msk.bf16.vlgmr.msra.gmra.mrb[0].mxu0 %vm88_vm0, %v85_v7  ;;  %v157_v28 = vadd.s32 %v156_v27, %v154_v26  ;;  %v191_v57 = vld [vmem:[#allocation4] sm:$0xf]  ;;  %p395_p0 = pnand %p394_p13, %p388_p10 }
  0x4b   :  { %v158_v29 = vshrl.u32 %v157_v28, 16 }
  0x4d   :  { %v159_v30 = vxor.u32 %v158_v29, %v157_v28 }
  0x4f   :  { %v160_v31 = vmul.u32 2146121005, %v159_v30 }
  0x51   :  { %v161_v32 = vshrl.u32 %v160_v31, 15 }
  0x53   :  { %v162_v33 = vxor.u32 %v161_v32, %v160_v31 }
  0x55   :  { %v163_v34 = vmul.u32 2221713035, %v162_v33 }
  0x57   :  { %v164_v35 = vshrl.u32 %v163_v34, 16 }
  0x59   :  { %v165_v38 = vxor.u32 %v164_v35, %v163_v34 }
  0x5b   :  { %v166_v40 = vshrl.u32 %v165_v38, 8 }
  0x5d   :  { %vm168_vm5 = vcmp.ge.s32.totalorder %v166_v40, %v167_v41 }
  0x5e   :  { %v286_v42 = vsel %vm168_vm5, 1.0, %v423_v1 }
 0x11c   :  { %v129_v8 = vpop.f32.mrb[0].mxu0 }
 0x11d   :  { %v296_v9 = vpop.f32.mrb[1].mxu0  ;;  %v137_v10 = vsel %vm136_vm2, %v129_v8, -inf }
 0x11e   :  { %138 = vmax.xlane.f32.xlu0 %v137_v10  ;;  %v132_v11 = vpop.f32.mrb[2].mxu0 }
 0x11f   :  { %v297_v12 = vpop.f32.mrb[3].mxu0 }
 0x1ab   :  { %v139_v16 = vpop.xlane.xlu0 %138 }
 0x1ac   :  { %v140_v17 = vmax.f32 %v135_v15, %v139_v16 }
 0x1ae   :  { %v141_v18 = vsub.f32 %v135_v15, %v140_v17  ;;  %249 = vst.msk [vmem:[#allocation2] sm:$0xf] %vm73_vm3, %v140_v17  ;;  %173 = vperm.xlu0 %313, %v140_v17  }
 0x1b0   :  { %v142_v47 = vmul.f32 1.442695, %v141_v18 }
 0x22d   :  { %v174_v36 = vpop.permute.xlu0 %173 }
 0x22e   :  { %v176_v37 = vsub.f32 %v129_v8, %v174_v36 }
 0x230   :  { %v177_v39 = vmul.f32 1.442695, %v176_v37 }
 0x232   :  { %315 = vpow2.f32 %v177_v39 }
 0x233   :  { %317 = vpow2.f32 %v142_v47 }
 0x23c   :  { %v316_v43 = vpop.eup %315 }
 0x23d   :  { %v181_v44 = vsel %vm136_vm2, %v316_v43, 0.0  ;;  %v187_v45 = vmul.f32 %v316_v43, %v286_v42  ;;  %v318_v48 = vpop.eup %317 }
 0x23e   :  { %182 = vadd.xlane.f32.xlu1 %v181_v44  ;;  %v180_v50 = vmul.f32 %v318_v48, %v179_v49 }
 0x23f   :  { %v188_v46 = vpack.c.bf16 %v187_v45, %v187_v45 }
 0x241   :  { %301 = vmatmul.mubr.msk.bf16.vlgmr.msra.gmra.mrb[0].mxu1 %vm198_vm6, %v188_v46 }
 0x24f   :  { %194 = vperm.xlu1 %314, %v318_v48  }
 0x2cb   :  { %v183_v51 = vpop.xlane.xlu1 %182 }
 0x2cc   :  { %v184_v52 = vadd.f32 %v183_v51, %v180_v50 }
 0x2ce   :  { %186 = vst.msk [vmem:[#allocation3] sm:$0xf] %vm73_vm3, %v184_v52 }
 0x2cf   :  { %v195_v58 = vpop.permute.xlu1 %194 }
 0x2d0   :  { %v197_v59 = vmul.f32 %v195_v58, %v191_v57 }
 0x2d5   :  { %v253_v53 = vld [vmem:[#allocation3] sm:$0xf] }
 0x2d6   :  { %319 = vrcp.f32 %v253_v53 }
 0x2e0   :  { %v320_v55 = vpop.eup %319 }
 0x2e1   :  { %v256_v56 = vmul.f32 %v320_v55, %v255_v54 }
 0x2e3   :  { %260 = vperm.xlu1 %314, %v256_v56  }
 0x314   :  { %v240_v60 = vpop.f32.mrb[0].mxu1 }
 0x315   :  { %v246_v61 = vadd.f32 %v240_v60, %v197_v59  ;;  %v302_v62 = vpop.f32.mrb[1].mxu1 }
 0x316   :  { %v243_v63 = vpop.f32.mrb[2].mxu1 }
 0x317   :  { %248 = vst.msk [vmem:[#allocation4] sm:$0xf] %vm76_vm7, %v246_v61  ;;  %v303_v0 = vpop.f32.mrb[3].mxu1 }
 0x31e   :  { %v257_v1 = vld [vmem:[#allocation4] sm:$0xf] }
 0x362   :  { %v261_v2 = vpop.permute.xlu1 %260 }
 0x363   :  { %v263_v3 = vmul.f32 %v261_v2, %v257_v1 }
 0x365   :  { %264 = vst.msk [vmem:[#allocation14] sm:$0xf] %vm76_vm7, %v263_v3 }
 0x366   :  { %398 = shalt.err (!%p395_p0)
}
 0x367   :  { %s399_s12 = scalar_lea.hbm %s533_s5, 64 }
 0x368   :  { %p400_p1 = scmp.ne.s32.totalorder %s533_s5, %s399_s12  ;;  %p403_p2 = scmp.lt.u32.totalorder %s399_s12, %s533_s5 }
 0x36a   :  { %p405_p3 = pnand %p403_p2, %p400_p1 }
 0x36c   :  { %408 = shalt.err (!%p405_p3)
}
 0x36d   :  { %274 = dma.vmem_to_hbm [thread:$0]  %s272_s8, 64, %s533_s5, [#allocation7]  }
 0x36e   :  { %417 = dma.done.wait [#allocation7], 64  }
 0x36f   :  { %418 = vsyncadd [#allocation7], 4294967232 }
 0x370   :  { %278 = vsyncpa [#allocation6], 1 }
 0x371   :  { %279 = vsyncpa [#allocation13], 1 }
 0x372   :  { %280 = vsyncpa [#allocation7], 1 }
 0x373   :  { %281 = vsyncpa [#allocation8], 1 }
 0x374   :  { %282 = vsyncpa [#allocation9], 1 }

</bundles_post_ra>
